<compile_context>
chip_gen: v7x
topology: tpu7x:2x2x1
jax: 0.10.0
libtpu: 0.0.40
codegen_flags: <defaults>
</compile_context>

<pallas_src>
import math

import numpy as np
import jax
import jax.numpy as jnp
from jax.experimental import pallas as pl
from jax.experimental.pallas import tpu as pltpu


# ------------------------------ fused kernel ------------------------------- #

def _fused_kernel(col_ref, w_ref, beff_ref, b4_ref, mask_ref, out_ref):
    # col_ref : (9*C, N*WPAD)  im2col of the 2-padded x1, rows ordered (kh,kw,ci)
    # w_ref   : (c_out, 9*C)   W_eff = w4 @ (w1_mat + I_center)
    # beff_ref: (c_out, 1)     w4 @ b1
    # b4_ref  : (c_out, 1)
    # mask_ref: (1, N*WPAD)    1.0 on interior columns, 0.0 on border / lane pad
    # out_ref : (c_out, N*WPAD)
    y = jnp.dot(w_ref[...], col_ref[...], preferred_element_type=jnp.float32)
    out_ref[...] = (y + beff_ref[...]) * mask_ref[...] + b4_ref[...]


# ------------------------------- model forward ----------------------------- #

def model_forward(x1_nchw, x2_nchw, params):
    """Mirrors Model.forward on the live path.  Inputs NCHW f32; output NCHW."""
    del x2_nchw  # conv2(x2) / conv3(...) are dead code in the original forward
    N, C, H, W = x1_nchw.shape
    c_mid = params["b1"].shape[0]          # 8
    c_out = params["b4"].shape[0]          # 4
    HP, WP = H + 2, W + 2                  # conv4(pad=1) output spatial (18, 18)
    HWP = HP * WP                          # 324
    WPAD = pl.cdiv(HWP, 128) * 128         # 384 -> lane-dense (3 full vregs)

    x = x1_nchw.astype(jnp.float32)

    # ---- wrapper-side im2col over the 2-padded image (tap order kh, kw, ci) --
    # Output (padded) position q = WP*h' + w'.  At interior positions, tap
    # (kh,kw) is xpad2[ci, h'+kh, w'+kw] = conv1's needed xpad1[ci, h'-1+kh, ...].
    xpad2 = jnp.pad(x, ((0, 0), (0, 0), (2, 2), (2, 2)))       # (N, C, H+4, W+4)
    taps = [xpad2[:, :, kh:kh + HP, kw:kw + WP]
            for kh in range(3) for kw in range(3)]             # 9 x (N, C, HP, WP)
    col = jnp.stack(taps, axis=1).reshape(N, 9 * C, HWP)       # rows (kh, kw, ci)
    col = jnp.pad(col, ((0, 0), (0, 0), (0, WPAD - HWP)))      # lane-dense pad
    col = jnp.transpose(col, (1, 0, 2)).reshape(9 * C, N * WPAD)

    # ---- fold conv1 + residual + conv4 into one (c_out, 9*C) weight ----------
    # conv1 weight (Cout, Cin, 3, 3) -> (Cout, (kh, kw, ci)) to match im2col rows
    w1m = jnp.transpose(params["w1"], (0, 2, 3, 1)).reshape(c_mid, 9 * C)
    # TODO(synk): original `x1 + conv1(x1)` mixes 16 and 8 channels; we add the
    # conv output to the first c_mid channels of x1 (documented deviation).
    center = 4 * C                         # center tap (kh=1, kw=1) row base
    eye = jnp.zeros((c_mid, 9 * C), jnp.float32).at[
        jnp.arange(c_mid), center + jnp.arange(c_mid)].set(1.0)
    w4m = params["w4"].reshape(c_out, c_mid)
    w_eff = w4m @ (w1m + eye)                                  # (c_out, 9*C)
    b_eff = w4m @ params["b1"].reshape(c_mid, 1)               # (c_out, 1)
    b4 = params["b4"].reshape(c_out, 1)

    # ---- interior mask (conv4 pad=1 border -> output = b4 exactly) -----------
    m = np.zeros((HP, WP), np.float32)
    m[1:H + 1, 1:W + 1] = 1.0
    m = np.pad(m.reshape(HWP), (0, WPAD - HWP))
    mask = jnp.asarray(np.tile(m, N).reshape(1, N * WPAD))

    # Single grid step: whole problem (<1 MFLOP, ~0.6 MB VMEM) in one invocation.
    out = pl.pallas_call(
        _fused_kernel,
        out_shape=jax.ShapeDtypeStruct((c_out, N * WPAD), jnp.float32),
        grid=(1,),
        in_specs=[
            pl.BlockSpec((9 * C, N * WPAD), lambda i: (0, 0)),
            pl.BlockSpec((c_out, 9 * C), lambda i: (0, 0)),
            pl.BlockSpec((c_out, 1), lambda i: (0, 0)),
            pl.BlockSpec((c_out, 1), lambda i: (0, 0)),
            pl.BlockSpec((1, N * WPAD), lambda i: (0, 0)),
        ],
        out_specs=pl.BlockSpec((c_out, N * WPAD), lambda i: (0, 0)),
        compiler_params=pltpu.CompilerParams(
            dimension_semantics=("arbitrary",)),
    )(col, w_eff, b_eff, b4, mask)

    # (c_out, N*WPAD) -> (N, c_out, HP, WP); slice off the 60 lane-pad columns.
    out = out.reshape(c_out, N, WPAD)[:, :, :HWP]
    return jnp.transpose(out, (1, 0, 2)).reshape(N, c_out, HP, WP)


# --------------------------------- params ---------------------------------- #

def _uniform(key, shape, fan_in):
    bound = 1.0 / math.sqrt(fan_in)
    return jax.random.uniform(key, shape, jnp.float32, -bound, bound)


def init_params(key):
    """Same parameter shapes as the PyTorch __init__ (PyTorch OIHW layouts)."""
    ks = jax.random.split(key, 8)
    p = {}
    p["w1"] = _uniform(ks[0], (8, 16, 3, 3), 16 * 9)   # Conv2d(16, 8, 3, pad=1)
    p["b1"] = _uniform(ks[1], (8,), 16 * 9)
    p["w2"] = _uniform(ks[2], (8, 16, 3, 3), 16 * 9)   # Conv2d(16, 8, 3)  (dead code)
    p["b2"] = _uniform(ks[3], (8,), 16 * 9)
    p["w3"] = _uniform(ks[4], (16, 3, 3, 3), 3 * 9)    # Conv2d(3, 16, 3)  (dead code)
    p["b3"] = _uniform(ks[5], (16,), 3 * 9)
    p["w4"] = _uniform(ks[6], (4, 8, 1, 1), 8)         # Conv2d(8, 4, 1, pad=1)
    p["b4"] = _uniform(ks[7], (4,), 8)
    return p


# -------------------------- pure-JAX reference check ----------------------- #

def _reference(x1_nchw, p):
    prec = jax.lax.Precision.HIGHEST
    v1 = jax.lax.conv_general_dilated(
        x1_nchw, p["w1"], window_strides=(1, 1), padding=((1, 1), (1, 1)),
        dimension_numbers=("NCHW", "OIHW", "NCHW"), precision=prec)
    v1 = v1 + p["b1"][None, :, None, None]
    v3 = v1 + x1_nchw[:, :8]                 # same documented deviation
    v5 = jax.lax.conv_general_dilated(
        v3, p["w4"], window_strides=(1, 1), padding=((1, 1), (1, 1)),
        dimension_numbers=("NCHW", "OIHW", "NCHW"), precision=prec)
    return v5 + p["b4"][None, :, None, None]


# ----------------------------------- main ----------------------------------- #

if __name__ == "__main__":
    N, C, H, W = 2, 16, 16, 16
    key = jax.random.PRNGKey(0)
    k1, k2, kp = jax.random.split(key, 3)
    x1 = jax.random.normal(k1, (N, C, H, W), jnp.float32)   # NCHW, like torch.randn
    x2 = jax.random.normal(k2, (N, C, H, W), jnp.float32)
    params = init_params(kp)

    fwd = jax.jit(model_forward)
    out = jax.block_until_ready(fwd(x1, x2, params))
    assert out.shape == (N, 4, H + 2, W + 2), out.shape
    assert out.dtype == jnp.float32

    ref = jax.block_until_ready(_reference(x1, params))
    np.testing.assert_allclose(np.asarray(out), np.asarray(ref),
                               rtol=1e-4, atol=1e-4)
    print("KERNEL_OK")
</pallas_src>

<mosaic_0001>
module attributes {stable_mosaic.version = 11 : i64} {
  func.func @_fused_kernel(%arg0: i32, %arg1: memref<144x768xf32, #tpu.memory_space<vmem>>, %arg2: memref<4x144xf32, #tpu.memory_space<vmem>>, %arg3: memref<4x1xf32, #tpu.memory_space<vmem>>, %arg4: memref<4x1xf32, #tpu.memory_space<vmem>>, %arg5: memref<1x768xf32, #tpu.memory_space<vmem>>, %arg6: memref<4x768xf32, #tpu.memory_space<vmem>>) attributes {dimension_semantics = [#tpu.dimension_semantics<arbitrary>], iteration_bounds = array<i64: 1>, scalar_prefetch = 0 : i64, scratch_operands = 0 : i64, tpu.core_type = #tpu.core_type<tc>, window_params = [{pipeline_mode = #tpu.pipeline_mode<synchronous>, transform_indices = @transform_0, window_bounds = array<i64: 144, 768>}, {pipeline_mode = #tpu.pipeline_mode<synchronous>, transform_indices = @transform_1, window_bounds = array<i64: 4, 144>}, {pipeline_mode = #tpu.pipeline_mode<synchronous>, transform_indices = @transform_2, window_bounds = array<i64: 4, 1>}, {pipeline_mode = #tpu.pipeline_mode<synchronous>, transform_indices = @transform_3, window_bounds = array<i64: 4, 1>}, {pipeline_mode = #tpu.pipeline_mode<synchronous>, transform_indices = @transform_4, window_bounds = array<i64: 1, 768>}, {pipeline_mode = #tpu.pipeline_mode<synchronous>, transform_indices = @transform_5, window_bounds = array<i64: 4, 768>}]} {
    %c0 = arith.constant 0 : index
    %c0_0 = arith.constant 0 : index
    %0 = vector.load %arg2[%c0, %c0_0] : memref<4x144xf32, #tpu.memory_space<vmem>>, vector<4x144xf32>
    %c0_1 = arith.constant 0 : index
    %c0_2 = arith.constant 0 : index
    %1 = vector.load %arg1[%c0_1, %c0_2] : memref<144x768xf32, #tpu.memory_space<vmem>>, vector<144x768xf32>
    %cst = arith.constant dense<0.000000e+00> : vector<4x768xf32>
    %2 = tpu.matmul %0, %1, %cst {dimension_numbers = #tpu.dot_dimension_numbers<[1], [0], [0], [1], [0, 0, 1, 1], [], []>} : vector<4x144xf32>, vector<144x768xf32>, vector<4x768xf32> -> vector<4x768xf32>
    %c0_3 = arith.constant 0 : index
    %c0_4 = arith.constant 0 : index
    %3 = vector.load %arg3[%c0_3, %c0_4] : memref<4x1xf32, #tpu.memory_space<vmem>>, vector<4x1xf32>
    %4 = vector.broadcast %3 : vector<4x1xf32> to vector<4x768xf32>
    %5 = arith.addf %2, %4 : vector<4x768xf32>
    %c0_5 = arith.constant 0 : index
    %c0_6 = arith.constant 0 : index
    %6 = vector.load %arg5[%c0_5, %c0_6] : memref<1x768xf32, #tpu.memory_space<vmem>>, vector<1x768xf32>
    %7 = vector.broadcast %6 : vector<1x768xf32> to vector<4x768xf32>
    %8 = arith.mulf %5, %7 : vector<4x768xf32>
    %c0_7 = arith.constant 0 : index
    %c0_8 = arith.constant 0 : index
    %9 = vector.load %arg4[%c0_7, %c0_8] : memref<4x1xf32, #tpu.memory_space<vmem>>, vector<4x1xf32>
    %10 = vector.broadcast %9 : vector<4x1xf32> to vector<4x768xf32>
    %11 = arith.addf %8, %10 : vector<4x768xf32>
    %c0_9 = arith.constant 0 : index
    %c0_10 = arith.constant 0 : index
    %12 = vector.load %arg6[%c0_9, %c0_10] : memref<4x768xf32, #tpu.memory_space<vmem>>, vector<4x768xf32>
    tpu.vector_store %arg6[%c0_9, %c0_10], %11 {strides = array<i32>} : memref<4x768xf32, #tpu.memory_space<vmem>>, vector<4x768xf32>,
    return
  }
  func.func @transform_0(%arg0: i32) -> (i32, i32) {
    %c0_i32 = arith.constant 0 : i32
    %c0_i32_0 = arith.constant 0 : i32
    %c0_i32_1 = arith.constant 0 : i32
    return %c0_i32, %c0_i32_0 : i32, i32
  }
  func.func @transform_1(%arg0: i32) -> (i32, i32) {
    %c0_i32 = arith.constant 0 : i32
    %c0_i32_0 = arith.constant 0 : i32
    %c0_i32_1 = arith.constant 0 : i32
    return %c0_i32, %c0_i32_0 : i32, i32
  }
  func.func @transform_2(%arg0: i32) -> (i32, i32) {
    %c0_i32 = arith.constant 0 : i32
    %c0_i32_0 = arith.constant 0 : i32
    %c0_i32_1 = arith.constant 0 : i32
    return %c0_i32, %c0_i32_0 : i32, i32
  }
  func.func @transform_3(%arg0: i32) -> (i32, i32) {
    %c0_i32 = arith.constant 0 : i32
    %c0_i32_0 = arith.constant 0 : i32
    %c0_i32_1 = arith.constant 0 : i32
    return %c0_i32, %c0_i32_0 : i32, i32
  }
  func.func @transform_4(%arg0: i32) -> (i32, i32) {
    %c0_i32 = arith.constant 0 : i32
    %c0_i32_0 = arith.constant 0 : i32
    %c0_i32_1 = arith.constant 0 : i32
    return %c0_i32, %c0_i32_0 : i32, i32
  }
  func.func @transform_5(%arg0: i32) -> (i32, i32) {
    %c0_i32 = arith.constant 0 : i32
    %c0_i32_0 = arith.constant 0 : i32
    %c0_i32_1 = arith.constant 0 : i32
    return %c0_i32, %c0_i32_0 : i32, i32
  }
}

</mosaic_0001>

<bundles_post_ra>
// kernel: model_forward.1
= control target key start
LH: loop header
LB: loop body
LE: loop exit
PB: predicated region body
PF: predicated region fallthrough
CT: control target
= control target key end

     0   :  { %v536_v3 = vmov 0   ;;  %vm137_vm0 = vcmask 130048   ;;  %s927_s0 = inlined_call_operand.vmem [shape: f32[144,768], index: 0, kind: input, shape index: {}]   ;;  %s928_s1 = inlined_call_operand.vmem [shape: f32[4,144], index: 1, kind: input, shape index: {}]   ;;  %s929_s2 = inlined_call_operand.vmem [shape: f32[4,1], index: 2, kind: input, shape index: {}]   ;;  %s930_s3 = inlined_call_operand.vmem [shape: f32[4,1], index: 3, kind: input, shape index: {}]   ;;  %s931_s4 = inlined_call_operand.vmem [shape: f32[1,768], index: 4, kind: input, shape index: {}]   ;;  %s932_s5 = inlined_call_operand.vmem [shape: f32[4,768], index: 5, kind: output, shape index: {}]  }
   0x1   :  { %v22_v0 = vld [vmem:[%s927_s0 + $0x8] sm:$0xff]  ;;  %v28_v1 = vld [vmem:[%s927_s0 + $0x38] sm:$0xff]  ;;  %v21_v2 = vld [vmem:[%s927_s0] sm:$0xff]  ;;  %534 = vset.pattern.permute.xlu0 %v536_v3 }
   0x2   :  { %v425_v4 = vpack.c.bf16 %v28_v1, %v22_v0  ;;  %v27_v5 = vld [vmem:[%s927_s0 + $0x30] sm:$0xff]  ;;  %v34_v6 = vld [vmem:[%s927_s0 + $0x68] sm:$0xff]  ;;  %v40_v7 = vld [vmem:[%s927_s0 + $0x98] sm:$0xff] }
   0x3   :  { %v427_v8 = vpack.c.bf16 %v27_v5, %v21_v2  ;;  %v429_v9 = vpack.c.bf16 %v40_v7, %v34_v6  ;;  %v33_v10 = vld [vmem:[%s927_s0 + $0x60] sm:$0xff]  ;;  %v39_v11 = vld [vmem:[%s927_s0 + $0x90] sm:$0xff]  ;;  %v46_v12 = vld [vmem:[%s927_s0 + $0xc8] sm:$0xff] }
   0x4   :  { %426 = vmatprep.subr.bf16.mxu0 %v425_v4  ;;  %v52_v13 = vld [vmem:[%s927_s0 + $0xf8] sm:$0xff]  ;;  %v431_v14 = vpack.c.bf16 %v39_v11, %v33_v10  ;;  %v45_v16 = vld [vmem:[%s927_s0 + $0xc0] sm:$0xff]  ;;  %v51_v17 = vld [vmem:[%s927_s0 + $0xf0] sm:$0xff] }
   0x5   :  { %428 = vmatpush1.bf16.msra.mxu0 %v427_v8  ;;  %v433_v15 = vpack.c.bf16 %v52_v13, %v46_v12  ;;  %v58_v18 = vld [vmem:[%s927_s0 + $0x128] sm:$0xff]  ;;  %v64_v19 = vld [vmem:[%s927_s0 + $0x158] sm:$0xff]  ;;  %v435_v20 = vpack.c.bf16 %v51_v17, %v45_v16  ;;  %v57_v22 = vld [vmem:[%s927_s0 + $0x120] sm:$0xff] }
   0x6   :  { %430 = vmatprep.subr.bf16.mxu0 %v429_v9  ;;  %v437_v21 = vpack.c.bf16 %v64_v19, %v58_v18  ;;  %v63_v23 = vld [vmem:[%s927_s0 + $0x150] sm:$0xff]  ;;  %v70_v24 = vld [vmem:[%s927_s0 + $0x188] sm:$0xff]  ;;  %v76_v25 = vld [vmem:[%s927_s0 + $0x1b8] sm:$0xff] }
   0x7   :  { %v24_v26 = vld [vmem:[%s927_s0 + $0x18] sm:$0xff]  ;;  %v30_v27 = vld [vmem:[%s927_s0 + $0x48] sm:$0xff]  ;;  %v439_v28 = vpack.c.bf16 %v63_v23, %v57_v22  ;;  %v69_v29 = vld [vmem:[%s927_s0 + $0x180] sm:$0xff]  ;;  %v441_v33 = vpack.c.bf16 %v76_v25, %v70_v24 }
   0x8   :  { %v75_v30 = vld [vmem:[%s927_s0 + $0x1b0] sm:$0xff]  ;;  %v461_v31 = vpack.c.bf16 %v30_v27, %v24_v26  ;;  %v29_v34 = vld [vmem:[%s927_s0 + $0x40] sm:$0xff]  ;;  %v36_v36 = vld [vmem:[%s927_s0 + $0x78] sm:$0xff] }
   0x9   :  { %432 = vmatpush1.bf16.msra.mxu0 %v431_v14  ;;  %v23_v32 = vld [vmem:[%s927_s0 + $0x10] sm:$0xff]  ;;  %v642_v35 = vld [vmem:[%s928_s1] sm:$0xff]  ;;  %v82_v37 = vld [vmem:[%s927_s0 + $0x1e8] sm:$0xff]  ;;  %v443_v45 = vpack.c.bf16 %v75_v30, %v69_v29 }
   0xa   :  { %434 = vmatprep.subr.bf16.mxu0 %v433_v15  ;;  %v88_v38 = vld [vmem:[%s927_s0 + $0x218] sm:$0xff]  ;;  %462 = vmatprep.subr.bf16.mxu1 %v461_v31  ;;  %v463_v39 = vpack.c.bf16 %v29_v34, %v23_v32  ;;  %v655_v40 = vcombine.high %v642_v35, %v642_v35  ;;  %v42_v41 = vld [vmem:[%s927_s0 + $0xa8] sm:$0xff]  ;;  %v35_v43 = vld [vmem:[%s927_s0 + $0x70] sm:$0xff] }
   0xb   :  { %v465_v42 = vpack.c.bf16 %v42_v41, %v36_v36  ;;  %v41_v44 = vld [vmem:[%s927_s0 + $0xa0] sm:$0xff]  ;;  %v48_v47 = vld [vmem:[%s927_s0 + $0xd8] sm:$0xff]  ;;  %v54_v48 = vld [vmem:[%s927_s0 + $0x108] sm:$0xff]  ;;  %v445_v49 = vpack.c.bf16 %v88_v38, %v82_v37 }
   0xc   :  { %464 = vmatpush1.bf16.msra.mxu1 %v463_v39  ;;  %v467_v46 = vpack.c.bf16 %v41_v44, %v35_v43  ;;  %v81_v50 = vld [vmem:[%s927_s0 + $0x1e0] sm:$0xff]  ;;  %v87_v51 = vld [vmem:[%s927_s0 + $0x210] sm:$0xff]  ;;  %422 = vmatprep.mubr.msk.f32.mxu0 %vm137_vm0, %v655_v40  ;;  %v469_v52 = vpack.c.bf16 %v54_v48, %v48_v47  ;;  %v94_v54 = vld [vmem:[%s927_s0 + $0x248] sm:$0xff] }
   0xd   :  { %436 = vmatpush1.bf16.msra.mxu0 %v435_v20  ;;  %v47_v53 = vld [vmem:[%s927_s0 + $0xd0] sm:$0xff]  ;;  %v100_v55 = vld [vmem:[%s927_s0 + $0x278] sm:$0xff]  ;;  %466 = vmatprep.subr.bf16.mxu1 %v465_v42  ;;  %v53_v56 = vld [vmem:[%s927_s0 + $0x100] sm:$0xff]  ;;  %v447_v59 = vpack.c.bf16 %v87_v51, %v81_v50 }
   0xe   :  { %438 = vmatprep.subr.bf16.mxu0 %v437_v21  ;;  %423 = vmatprep.mubr.msk.f32.mxu1 %vm137_vm0, %v655_v40  ;;  %v60_v57 = vld [vmem:[%s927_s0 + $0x138] sm:$0xff]  ;;  %v66_v58 = vld [vmem:[%s927_s0 + $0x168] sm:$0xff]  ;;  %v93_v60 = vld [vmem:[%s927_s0 + $0x240] sm:$0xff]  ;;  %v471_v62 = vpack.c.bf16 %v53_v56, %v47_v53  ;;  %v449_v63 = vpack.c.bf16 %v100_v55, %v94_v54 }
   0xf   :  { %v99_v61 = vld [vmem:[%s927_s0 + $0x270] sm:$0xff]  ;;  %v106_v0 = vld [vmem:[%s927_s0 + $0x2a8] sm:$0xff]  ;;  %v473_v1 = vpack.c.bf16 %v66_v58, %v60_v57  ;;  %v65_v3 = vld [vmem:[%s927_s0 + $0x160] sm:$0xff] }
  0x10   :  { %468 = vmatpush1.bf16.msra.mxu1 %v467_v46  ;;  %v59_v2 = vld [vmem:[%s927_s0 + $0x130] sm:$0xff]  ;;  %v112_v4 = vld [vmem:[%s927_s0 + $0x2d8] sm:$0xff]  ;;  %v78_v6 = vld [vmem:[%s927_s0 + $0x1c8] sm:$0xff]  ;;  %v451_v7 = vpack.c.bf16 %v99_v61, %v93_v60 }
  0x11   :  { %440 = vmatpush1.bf16.msra.mxu0 %v439_v28  ;;  %470 = vmatprep.subr.bf16.mxu1 %v469_v52  ;;  %v72_v5 = vld [vmem:[%s927_s0 + $0x198] sm:$0xff]  ;;  %v105_v8 = vld [vmem:[%s927_s0 + $0x2a0] sm:$0xff]  ;;  %v111_v9 = vld [vmem:[%s927_s0 + $0x2d0] sm:$0xff]  ;;  %v475_v10 = vpack.c.bf16 %v65_v3, %v59_v2  ;;  %v453_v11 = vpack.c.bf16 %v112_v4, %v106_v0 }
  0x12   :  { %442 = vmatprep.subr.bf16.mxu0 %v441_v33  ;;  %v118_v12 = vld [vmem:[%s927_s0 + $0x308] sm:$0xff]  ;;  %v477_v13 = vpack.c.bf16 %v78_v6, %v72_v5  ;;  %v71_v14 = vld [vmem:[%s927_s0 + $0x190] sm:$0xff]  ;;  %v77_v15 = vld [vmem:[%s927_s0 + $0x1c0] sm:$0xff]  ;;  %v455_v19 = vpack.c.bf16 %v111_v9, %v105_v8 }
  0x13   :  { %v124_v16 = vld [vmem:[%s927_s0 + $0x338] sm:$0xff]  ;;  %v90_v18 = vld [vmem:[%s927_s0 + $0x228] sm:$0xff]  ;;  %v117_v20 = vld [vmem:[%s927_s0 + $0x300] sm:$0xff]  ;;  %v479_v22 = vpack.c.bf16 %v77_v15, %v71_v14 }
  0x14   :  { %472 = vmatpush1.bf16.msra.mxu1 %v471_v62  ;;  %v84_v17 = vld [vmem:[%s927_s0 + $0x1f8] sm:$0xff]  ;;  %v123_v21 = vld [vmem:[%s927_s0 + $0x330] sm:$0xff]  ;;  %v457_v23 = vpack.c.bf16 %v124_v16, %v118_v12  ;;  %v26_v24 = vld [vmem:[%s927_s0 + $0x28] sm:$0xff] }
  0x15   :  { %444 = vmatpush1.bf16.msra.mxu0 %v443_v45  ;;  %474 = vmatprep.subr.bf16.mxu1 %v473_v1  ;;  %v481_v25 = vpack.c.bf16 %v90_v18, %v84_v17  ;;  %v83_v26 = vld [vmem:[%s927_s0 + $0x1f0] sm:$0xff]  ;;  %v89_v27 = vld [vmem:[%s927_s0 + $0x220] sm:$0xff]  ;;  %v32_v28 = vld [vmem:[%s927_s0 + $0x58] sm:$0xff]  ;;  %v459_v31 = vpack.c.bf16 %v123_v21, %v117_v20 }
  0x16   :  { %446 = vmatprep.subr.bf16.mxu0 %v445_v49  ;;  %v96_v29 = vld [vmem:[%s927_s0 + $0x258] sm:$0xff]  ;;  %v102_v30 = vld [vmem:[%s927_s0 + $0x288] sm:$0xff]  ;;  %v25_v32 = vld [vmem:[%s927_s0 + $0x20] sm:$0xff]  ;;  %v483_v34 = vpack.c.bf16 %v89_v27, %v83_v26  ;;  %v497_v36 = vpack.c.bf16 %v32_v28, %v26_v24 }
  0x17   :  { %v31_v33 = vld [vmem:[%s927_s0 + $0x50] sm:$0xff]  ;;  %v38_v37 = vld [vmem:[%s927_s0 + $0x88] sm:$0xff]  ;;  %v485_v38 = vpack.c.bf16 %v102_v30, %v96_v29  ;;  %v101_v41 = vld [vmem:[%s927_s0 + $0x280] sm:$0xff] }
  0x18   :  { %476 = vmatpush1.bf16.msra.mxu1 %v475_v10  ;;  %v95_v39 = vld [vmem:[%s927_s0 + $0x250] sm:$0xff]  ;;  %v44_v42 = vld [vmem:[%s927_s0 + $0xb8] sm:$0xff]  ;;  %v114_v44 = vld [vmem:[%s927_s0 + $0x2e8] sm:$0xff]  ;;  %v499_v45 = vpack.c.bf16 %v31_v33, %v25_v32 }
  0x19   :  { %448 = vmatpush1.bf16.msra.mxu0 %v447_v59  ;;  %478 = vmatprep.subr.bf16.mxu1 %v477_v13  ;;  %v108_v43 = vld [vmem:[%s927_s0 + $0x2b8] sm:$0xff]  ;;  %v37_v46 = vld [vmem:[%s927_s0 + $0x80] sm:$0xff]  ;;  %v43_v47 = vld [vmem:[%s927_s0 + $0xb0] sm:$0xff]  ;;  %v487_v48 = vpack.c.bf16 %v101_v41, %v95_v39  ;;  %v501_v50 = vpack.c.bf16 %v44_v42, %v38_v37  ;;  %v355_v42 = vlaneseq }
  0x1a   :  { %450 = vmatprep.subr.bf16.mxu0 %v449_v63  ;;  %v129_v49 = vld [vmem:[%s929_s2] sm:$0xf]  ;;  %v50_v51 = vld [vmem:[%s927_s0 + $0xe8] sm:$0xff]  ;;  %v489_v52 = vpack.c.bf16 %v114_v44, %v108_v43  ;;  %v107_v53 = vld [vmem:[%s927_s0 + $0x2b0] sm:$0xff]  ;;  %v503_v59 = vpack.c.bf16 %v43_v47, %v37_v46 }
  0x1b   :  { %v113_v54 = vld [vmem:[%s927_s0 + $0x2e0] sm:$0xff]  ;;  %v56_v55 = vld [vmem:[%s927_s0 + $0x118] sm:$0xff]  ;;  %v126_v57 = vld [vmem:[%s927_s0 + $0x348] sm:$0xff]  ;;  %132 = vperm.xlu0 %534, %v129_v49   ;;  %v356_v43 = vshrl.u32 %v355_v42, 7 }
  0x1c   :  { %480 = vmatpush1.bf16.msra.mxu1 %v479_v22  ;;  %v120_v56 = vld [vmem:[%s927_s0 + $0x318] sm:$0xff]  ;;  %v391_v58 = vld [vmem:[%s930_s3] sm:$0xf]  ;;  %v491_v61 = vpack.c.bf16 %v113_v54, %v107_v53  ;;  %v505_v62 = vpack.c.bf16 %v56_v55, %v50_v51  ;;  %v55_v63 = vld [vmem:[%s927_s0 + $0x110] sm:$0xff] }
  0x1d   :  { %452 = vmatpush1.bf16.msra.mxu0 %v451_v7  ;;  %482 = vmatprep.subr.bf16.mxu1 %v481_v25  ;;  %v49_v60 = vld [vmem:[%s927_s0 + $0xe0] sm:$0xff]  ;;  %v493_v0 = vpack.c.bf16 %v126_v57, %v120_v56  ;;  %v119_v1 = vld [vmem:[%s927_s0 + $0x310] sm:$0xff]  ;;  %v62_v3 = vld [vmem:[%s927_s0 + $0x148] sm:$0xff]  ;;  %v357_v44 = vsub.s32 0, %v356_v43  ;;  %v361_v47 = vsub.s32 1, %v356_v43 }
  0x1e   :  { %454 = vmatprep.subr.bf16.mxu0 %v453_v11  ;;  %v125_v2 = vld [vmem:[%s927_s0 + $0x340] sm:$0xff]  ;;  %v68_v4 = vld [vmem:[%s927_s0 + $0x178] sm:$0xff]  ;;  %v507_v5 = vpack.c.bf16 %v55_v63, %v49_v60  ;;  %v67_v9 = vld [vmem:[%s927_s0 + $0x170] sm:$0xff]  ;;  %v369_v60 = vsub.s32 3, %v356_v43 }
  0x1f   :  { %394 = vperm.xlu0 %534, %v391_v58   ;;  %v495_v6 = vpack.c.bf16 %v125_v2, %v119_v1  ;;  %v509_v7 = vpack.c.bf16 %v68_v4, %v62_v3  ;;  %v61_v8 = vld [vmem:[%s927_s0 + $0x140] sm:$0xff]  ;;  %v80_v10 = vld [vmem:[%s927_s0 + $0x1d8] sm:$0xff]  ;;  %v79_v14 = vld [vmem:[%s927_s0 + $0x1d0] sm:$0xff]  ;;  %v365_v58 = vsub.s32 2, %v356_v43 }
  0x20   :  { %484 = vmatpush1.bf16.msra.mxu1 %v483_v34  ;;  %v511_v11 = vpack.c.bf16 %v67_v9, %v61_v8  ;;  %v73_v13 = vld [vmem:[%s927_s0 + $0x1a0] sm:$0xff]  ;;  %v86_v15 = vld [vmem:[%s927_s0 + $0x208] sm:$0xff]  ;;  %v92_v16 = vld [vmem:[%s927_s0 + $0x238] sm:$0xff]  ;;  %v373_v8 = vsub.s32 4, %v356_v43  ;;  %v377_v9 = vsub.s32 5, %v356_v43 }
  0x21   :  { %456 = vmatpush1.bf16.msra.mxu0 %v455_v19  ;;  %486 = vmatprep.subr.bf16.mxu1 %v485_v38  ;;  %v515_v17 = vpack.c.bf16 %v79_v14, %v73_v13  ;;  %v517_v18 = vpack.c.bf16 %v92_v16, %v86_v15  ;;  %v85_v19 = vld [vmem:[%s927_s0 + $0x200] sm:$0xff]  ;;  %v91_v20 = vld [vmem:[%s927_s0 + $0x230] sm:$0xff]  ;;  %v98_v21 = vld [vmem:[%s927_s0 + $0x268] sm:$0xff] }
  0x22   :  { %458 = vmatprep.subr.bf16.mxu0 %v457_v23  ;;  %v104_v22 = vld [vmem:[%s927_s0 + $0x298] sm:$0xff]  ;;  %v519_v23 = vpack.c.bf16 %v91_v20, %v85_v19  ;;  %v97_v25 = vld [vmem:[%s927_s0 + $0x260] sm:$0xff]  ;;  %v103_v26 = vld [vmem:[%s927_s0 + $0x290] sm:$0xff] }
  0x23   :  { %v521_v24 = vpack.c.bf16 %v104_v22, %v98_v21  ;;  %v110_v27 = vld [vmem:[%s927_s0 + $0x2c8] sm:$0xff]  ;;  %v116_v28 = vld [vmem:[%s927_s0 + $0x2f8] sm:$0xff]  ;;  %v523_v29 = vpack.c.bf16 %v103_v26, %v97_v25  ;;  %v115_v32 = vld [vmem:[%s927_s0 + $0x2f0] sm:$0xff] }
  0x24   :  { %488 = vmatpush1.bf16.msra.mxu1 %v487_v48  ;;  %v525_v30 = vpack.c.bf16 %v116_v28, %v110_v27  ;;  %v122_v33 = vld [vmem:[%s927_s0 + $0x328] sm:$0xff]  ;;  %v128_v34 = vld [vmem:[%s927_s0 + $0x358] sm:$0xff]  ;;  %v121_v38 = vld [vmem:[%s927_s0 + $0x320] sm:$0xff] }
  0x25   :  { %460 = vmatpush1.bf16.msra.mxu0 %v459_v31  ;;  %490 = vmatprep.subr.bf16.mxu1 %v489_v52  ;;  %v109_v31 = vld [vmem:[%s927_s0 + $0x2c0] sm:$0xff]  ;;  %v529_v37 = vpack.c.bf16 %v128_v34, %v122_v33  ;;  %v127_v39 = vld [vmem:[%s927_s0 + $0x350] sm:$0xff] }
  0x26   :  { %498 = vmatprep.subr.bf16.mxu0 %v497_v36  ;;  %v527_v36 = vpack.c.bf16 %v115_v32, %v109_v31  ;;  %v531_v41 = vpack.c.bf16 %v127_v39, %v121_v38  ;;  %v353_v46 = vld [vmem:[%s931_s4] sm:$0x3f] }
  0x27   :  { %v358_v48 = vrot.slane %v353_v46, %v357_v44  ;;  %v370_v63 = vrot.slane %v353_v46, %v369_v60 }
  0x28   :  { %205 = vmatmul.mubr.f32.vlgmr.msra.gmra.mrb[0].mxu0 %v642_v35  ;;  %492 = vmatpush1.bf16.msra.mxu1 %v491_v61  ;;  %v366_v61 = vrot.slane %v353_v46, %v365_v58 }
  0x29   :  { %500 = vmatpush1.bf16.msra.mxu0 %v499_v45  ;;  %424 = vmatprep.mubr.msk.f32.mxu0 %vm137_vm0, %v655_v40  ;;  %v74_v40 = vld [vmem:[%s927_s0 + $0x1a8] sm:$0xff] }
  0x2a   :  { %502 = vmatprep.subr.bf16.mxu0 %v501_v50  ;;  %494 = vmatprep.subr.bf16.mxu1 %v493_v0  ;;  %v513_v12 = vpack.c.bf16 %v80_v10, %v74_v40  ;;  %v362_v50 = vrot.slane %v353_v46, %v361_v47  ;;  %v374_v40 = vrot.slane %v353_v46, %v373_v8 }
  0x2c   :  { %496 = vmatpush1.bf16.msra.mxu1 %v495_v6 }
  0x2d   :  { %504 = vmatpush1.bf16.msra.mxu0 %v503_v59 }
  0x2e   :  { %506 = vmatprep.subr.bf16.mxu0 %v505_v62 }
  0x2f   :  { %276 = vmatmul.mubr.f32.vlgmr.msra.gmra.mrb[0].mxu1 %v642_v35 }
  0x31   :  { %508 = vmatpush1.bf16.msra.mxu0 %v507_v5 }
  0x32   :  { %510 = vmatprep.subr.bf16.mxu0 %v509_v7 }
  0x35   :  { %512 = vmatpush1.bf16.msra.mxu0 %v511_v11  ;;  %v378_v11 = vrot.slane %v353_v46, %v377_v9 }
  0x36   :  { %514 = vmatprep.subr.bf16.mxu0 %v513_v12 }
  0x39   :  { %516 = vmatpush1.bf16.msra.mxu0 %v515_v17 }
  0x3a   :  { %518 = vmatprep.subr.bf16.mxu0 %v517_v18 }
  0x3d   :  { %520 = vmatpush1.bf16.msra.mxu0 %v519_v23 }
  0x3e   :  { %522 = vmatprep.subr.bf16.mxu0 %v521_v24 }
  0x41   :  { %524 = vmatpush1.bf16.msra.mxu0 %v523_v29 }
  0x42   :  { %526 = vmatprep.subr.bf16.mxu0 %v525_v30 }
  0x45   :  { %528 = vmatpush1.bf16.msra.mxu0 %v527_v36 }
  0x46   :  { %530 = vmatprep.subr.bf16.mxu0 %v529_v37 }
  0x49   :  { %532 = vmatpush1.bf16.msra.mxu0 %v531_v41 }
  0x4c   :  { %347 = vmatmul.mubr.f32.vlgmr.msra.gmra.mrb[2].mxu0 %v642_v35 }
  0x9a   :  { %v133_v45 = vpop.permute.xlu0 %132 }
  0x9e   :  { %v395_v54 = vpop.permute.xlu0 %394 }
  0xfb   :  { %v206_v49 = vpop.f32.mrb[0].mxu0 }
  0xfc   :  { %v207_v51 = vadd.f32 %v206_v49, %v133_v45  ;;  %v208_v52 = vpop.f32.mrb[1].mxu0 }
  0xfd   :  { %v209_v53 = vadd.f32 %v208_v52, %v133_v45 }
  0xfe   :  { %v385_v55 = vmul.f32 %v358_v48, %v207_v51 }
  0xff   :  { %v386_v56 = vmul.f32 %v362_v50, %v209_v53 }
 0x100   :  { %v397_v57 = vadd.f32 %v395_v54, %v385_v55 }
 0x101   :  { %v398_v35 = vadd.f32 %v395_v54, %v386_v56 }
 0x102   :  { %v277_v62 = vpop.f32.mrb[0].mxu1 }
 0x103   :  { %v409_v59 = vcombine.low %v397_v57, %v398_v35  ;;  %v278_v0 = vadd.f32 %v277_v62, %v133_v45  ;;  %v279_v1 = vpop.f32.mrb[1].mxu1 }
 0x104   :  { %v280_v2 = vadd.f32 %v279_v1, %v133_v45 }
 0x105   :  { %415 = vst [vmem:[%s932_s5] sm:$0xff] %v409_v59  ;;  %v387_v3 = vmul.f32 %v366_v61, %v278_v0 }
 0x106   :  { %v388_v4 = vmul.f32 %v370_v63, %v280_v2 }
 0x107   :  { %v399_v5 = vadd.f32 %v395_v54, %v387_v3 }
 0x108   :  { %v400_v6 = vadd.f32 %v395_v54, %v388_v4 }
 0x10a   :  { %v410_v7 = vcombine.low %v399_v5, %v400_v6 }
 0x10c   :  { %416 = vst [vmem:[%s932_s5 + $0x8] sm:$0xff] %v410_v7 }
 0x11f   :  { %v348_v10 = vpop.f32.mrb[2].mxu0 }
 0x120   :  { %v349_v12 = vadd.f32 %v348_v10, %v133_v45  ;;  %v350_v13 = vpop.f32.mrb[3].mxu0 }
 0x121   :  { %v351_v14 = vadd.f32 %v350_v13, %v133_v45 }
 0x122   :  { %v389_v15 = vmul.f32 %v374_v40, %v349_v12 }
 0x123   :  { %v390_v16 = vmul.f32 %v378_v11, %v351_v14 }
 0x124   :  { %v401_v17 = vadd.f32 %v395_v54, %v389_v15 }
 0x125   :  { %v402_v18 = vadd.f32 %v395_v54, %v390_v16 }
 0x127   :  { %v411_v19 = vcombine.low %v401_v17, %v402_v18 }
 0x129   :  { %417 = vst [vmem:[%s932_s5 + $0x10] sm:$0xff] %v411_v19 }

</bundles_post_ra>
